<compile_context>
chip_gen: v5e
topology: v5e:2x2
jax: 0.10.0
libtpu: 0.0.40
codegen_flags: <defaults>
</compile_context>

<pallas_src>
import jax
import jax.numpy as jnp
from jax.experimental import pallas as pl
from jax.experimental.pallas import tpu as pltpu


OUT_PAD = 128  # lane-dense padded logits width (real logits are the first 10)


def _mlp_kernel(x_ref, w1_ref, b1_ref, w2_ref, b2_ref, o_ref):
    # x arrives as bf16; cast to f32 once (1/255 already folded into W1).
    x = x_ref[...].astype(jnp.float32)
    h = jnp.dot(x, w1_ref[...], preferred_element_type=jnp.float32) + b1_ref[...]
    h = jnp.maximum(h, 0.0)
    y = jnp.dot(h, w2_ref[...], preferred_element_type=jnp.float32) + b2_ref[...]
    o_ref[...] = y  # (tile_b, 128) f32, unmasked lane-dense store


def _round_up(n, m):
    return ((n + m - 1) // m) * m


def neural_network_forward(x_nchw, w1, b1, w2, b2, *, tile_b=1024):
    """x_nchw: (B, 1, 28, 28) float pixels in [0, 255].  Returns (B, 10) f32 logits."""
    B = x_nchw.shape[0]
    x_flat = x_nchw.reshape(B, 28 * 28)

    # --- host-side prep (tiny, one-time) -----------------------------------
    # bf16 input: halves the dominant HBM->VMEM traffic.
    x_bf16 = x_flat.astype(jnp.bfloat16)
    # Fold the 1/255 scale into W1 so the kernel skips a VPU pass over x.
    w1s = w1.astype(jnp.float32) * (1.0 / 255.0)
    b1_2d = b1.reshape(1, -1).astype(jnp.float32)
    # Pad the output feature dim to 128 lanes for unmasked stores.
    w2p = jnp.zeros((w2.shape[0], OUT_PAD), jnp.float32).at[:, : w2.shape[1]].set(w2)
    b2p = jnp.zeros((1, OUT_PAD), jnp.float32).at[:, : w2.shape[1]].set(b2)

    # --- batch tiling -------------------------------------------------------
    tile_b = _round_up(max(16, min(tile_b, _round_up(B, 16))), 16)
    b_pad = _round_up(B, tile_b)
    if b_pad != B:
        x_bf16 = jnp.pad(x_bf16, ((0, b_pad - B), (0, 0)))
    num_tiles = b_pad // tile_b

    cost = pl.CostEstimate(
        flops=2 * b_pad * (784 * 20 + 20 * OUT_PAD),
        transcendentals=0,
        bytes_accessed=(
            x_bf16.size * 2
            + w1s.size * 4 + b1_2d.size * 4 + w2p.size * 4 + b2p.size * 4
            + b_pad * OUT_PAD * 4
        ),
    )

    out = pl.pallas_call(
        _mlp_kernel,
        out_shape=jax.ShapeDtypeStruct((b_pad, OUT_PAD), jnp.float32),
        grid_spec=pltpu.PrefetchScalarGridSpec(
            num_scalar_prefetch=0,
            grid=(num_tiles,),
            in_specs=[
                pl.BlockSpec((tile_b, 784), lambda i: (i, 0)),     # x  (bf16, tiled)
                pl.BlockSpec((784, 20), lambda i: (0, 0)),         # W1/255 (resident)
                pl.BlockSpec((1, 20), lambda i: (0, 0)),           # b1 (resident)
                pl.BlockSpec((20, OUT_PAD), lambda i: (0, 0)),     # W2 padded (resident)
                pl.BlockSpec((1, OUT_PAD), lambda i: (0, 0)),      # b2 padded (resident)
            ],
            out_specs=pl.BlockSpec((tile_b, OUT_PAD), lambda i: (i, 0)),
        ),
        compiler_params=pltpu.CompilerParams(
            dimension_semantics=("parallel",),
        ),
        cost_estimate=cost,
    )(x_bf16, w1s, b1_2d, w2p, b2p)

    return out[:B, :10]


def init_params(key):
    """Deterministic init mimicking torch.nn.Linear default (U[-1/sqrt(fan_in), +])."""
    k1, k2, k3, k4 = jax.random.split(key, 4)
    in1, out1 = 28 * 28, 20
    in2, out2 = 20, 10
    bound1 = 1.0 / jnp.sqrt(jnp.float32(in1))
    bound2 = 1.0 / jnp.sqrt(jnp.float32(in2))
    w1 = jax.random.uniform(k1, (in1, out1), jnp.float32, -bound1, bound1)
    b1 = jax.random.uniform(k2, (out1,), jnp.float32, -bound1, bound1)
    w2 = jax.random.uniform(k3, (in2, out2), jnp.float32, -bound2, bound2)
    b2 = jax.random.uniform(k4, (out2,), jnp.float32, -bound2, bound2)
    return w1, b1, w2, b2


if __name__ == "__main__":
    key = jax.random.PRNGKey(0)
    k_x, k_p = jax.random.split(key)

    # Fashion-MNIST style input: batch=2, 1 channel, 28x28, integer pixels 0..255
    # stored as float32 (the module divides by 255).  Integer pixel values are
    # exact in bfloat16, so the bf16 input path loses no precision here.
    x = jax.random.randint(k_x, (2, 1, 28, 28), 0, 256).astype(jnp.float32)
    w1, b1, w2, b2 = init_params(k_p)

    logits = neural_network_forward(x, w1, b1, w2, b2)
    logits = jax.block_until_ready(logits)

    # Pure-JAX reference check (matches the PyTorch forward pass)
    x_flat = x.reshape(x.shape[0], -1) / 255.0
    ref = jnp.maximum(x_flat @ w1 + b1, 0.0) @ w2 + b2
    assert logits.shape == (2, 10)
    assert jnp.allclose(logits, ref, atol=1e-3, rtol=1e-3), \
        f"max abs err = {jnp.max(jnp.abs(logits - ref))}"

    print("KERNEL_OK")
</pallas_src>

<mosaic_0001>
module attributes {stable_mosaic.version = 11 : i64} {
  func.func @_mlp_kernel(%arg0: i32, %arg1: memref<16x784xbf16, #tpu.memory_space<vmem>>, %arg2: memref<784x20xf32, #tpu.memory_space<vmem>>, %arg3: memref<1x20xf32, #tpu.memory_space<vmem>>, %arg4: memref<20x128xf32, #tpu.memory_space<vmem>>, %arg5: memref<1x128xf32, #tpu.memory_space<vmem>>, %arg6: memref<16x128xf32, #tpu.memory_space<vmem>>) attributes {dimension_semantics = [#tpu.dimension_semantics<parallel>], iteration_bounds = array<i64: 1>, scalar_prefetch = 0 : i64, scratch_operands = 0 : i64, tpu.core_type = #tpu.core_type<tc>, window_params = [{transform_indices = @transform_0, window_bounds = array<i64: 16, 784>}, {pipeline_mode = #tpu.pipeline_mode<synchronous>, transform_indices = @transform_1, window_bounds = array<i64: 784, 20>}, {pipeline_mode = #tpu.pipeline_mode<synchronous>, transform_indices = @transform_2, window_bounds = array<i64: 1, 20>}, {pipeline_mode = #tpu.pipeline_mode<synchronous>, transform_indices = @transform_3, window_bounds = array<i64: 20, 128>}, {pipeline_mode = #tpu.pipeline_mode<synchronous>, transform_indices = @transform_4, window_bounds = array<i64: 1, 128>}, {transform_indices = @transform_5, window_bounds = array<i64: 16, 128>}]} {
    %c0 = arith.constant 0 : index
    %c0_0 = arith.constant 0 : index
    %0 = vector.load %arg1[%c0, %c0_0] : memref<16x784xbf16, #tpu.memory_space<vmem>>, vector<16x784xbf16>
    %1 = arith.extf %0 : vector<16x784xbf16> to vector<16x784xf32>
    %c0_1 = arith.constant 0 : index
    %c0_2 = arith.constant 0 : index
    %2 = vector.load %arg2[%c0_1, %c0_2] : memref<784x20xf32, #tpu.memory_space<vmem>>, vector<784x20xf32>
    %cst = arith.constant dense<0.000000e+00> : vector<16x20xf32>
    %3 = tpu.matmul %1, %2, %cst {dimension_numbers = #tpu.dot_dimension_numbers<[1], [0], [0], [1], [0, 0, 1, 1], [], []>} : vector<16x784xf32>, vector<784x20xf32>, vector<16x20xf32> -> vector<16x20xf32>
    %c0_3 = arith.constant 0 : index
    %c0_4 = arith.constant 0 : index
    %4 = vector.load %arg3[%c0_3, %c0_4] : memref<1x20xf32, #tpu.memory_space<vmem>>, vector<1x20xf32>
    %5 = vector.broadcast %4 : vector<1x20xf32> to vector<16x20xf32>
    %6 = arith.addf %3, %5 : vector<16x20xf32>
    %cst_5 = arith.constant 0.000000e+00 : f32
    %7 = vector.broadcast %cst_5 : f32 to vector<16x20xf32>
    %8 = arith.maximumf %6, %7 : vector<16x20xf32>
    %c0_6 = arith.constant 0 : index
    %c0_7 = arith.constant 0 : index
    %9 = vector.load %arg4[%c0_6, %c0_7] : memref<20x128xf32, #tpu.memory_space<vmem>>, vector<20x128xf32>
    %cst_8 = arith.constant dense<0.000000e+00> : vector<16x128xf32>
    %10 = tpu.matmul %8, %9, %cst_8 {dimension_numbers = #tpu.dot_dimension_numbers<[1], [0], [0], [1], [0, 0, 1, 1], [], []>} : vector<16x20xf32>, vector<20x128xf32>, vector<16x128xf32> -> vector<16x128xf32>
    %c0_9 = arith.constant 0 : index
    %c0_10 = arith.constant 0 : index
    %11 = vector.load %arg5[%c0_9, %c0_10] : memref<1x128xf32, #tpu.memory_space<vmem>>, vector<1x128xf32>
    %12 = vector.broadcast %11 : vector<1x128xf32> to vector<16x128xf32>
    %13 = arith.addf %10, %12 : vector<16x128xf32>
    %c0_11 = arith.constant 0 : index
    %c0_12 = arith.constant 0 : index
    %14 = vector.load %arg6[%c0_11, %c0_12] : memref<16x128xf32, #tpu.memory_space<vmem>>, vector<16x128xf32>
    tpu.vector_store %arg6[%c0_11, %c0_12], %13 {strides = array<i32>} : memref<16x128xf32, #tpu.memory_space<vmem>>, vector<16x128xf32>,
    return
  }
  func.func @transform_0(%arg0: i32) -> (i32, i32) {
    %c0_i32 = arith.constant 0 : i32
    %c0_i32_0 = arith.constant 0 : i32
    return %arg0, %c0_i32 : i32, i32
  }
  func.func @transform_1(%arg0: i32) -> (i32, i32) {
    %c0_i32 = arith.constant 0 : i32
    %c0_i32_0 = arith.constant 0 : i32
    %c0_i32_1 = arith.constant 0 : i32
    return %c0_i32, %c0_i32_0 : i32, i32
  }
  func.func @transform_2(%arg0: i32) -> (i32, i32) {
    %c0_i32 = arith.constant 0 : i32
    %c0_i32_0 = arith.constant 0 : i32
    %c0_i32_1 = arith.constant 0 : i32
    return %c0_i32, %c0_i32_0 : i32, i32
  }
  func.func @transform_3(%arg0: i32) -> (i32, i32) {
    %c0_i32 = arith.constant 0 : i32
    %c0_i32_0 = arith.constant 0 : i32
    %c0_i32_1 = arith.constant 0 : i32
    return %c0_i32, %c0_i32_0 : i32, i32
  }
  func.func @transform_4(%arg0: i32) -> (i32, i32) {
    %c0_i32 = arith.constant 0 : i32
    %c0_i32_0 = arith.constant 0 : i32
    %c0_i32_1 = arith.constant 0 : i32
    return %c0_i32, %c0_i32_0 : i32, i32
  }
  func.func @transform_5(%arg0: i32) -> (i32, i32) {
    %c0_i32 = arith.constant 0 : i32
    %c0_i32_0 = arith.constant 0 : i32
    return %arg0, %c0_i32 : i32, i32
  }
}

</mosaic_0001>

<bundles_post_ra>
// kernel: tpu_custom_call.1
= control target key start
LH: loop header
LB: loop body
LE: loop exit
PB: predicated region body
PF: predicated region fallthrough
CT: control target
= control target key end

     0   :  { %s783_s0 = inlined_call_operand.vmem [shape: bf16[16,784], index: 0, kind: input, shape index: {}]   ;;  %s784_s1 = inlined_call_operand.vmem [shape: f32[784,20], index: 1, kind: input, shape index: {}]   ;;  %s785_s2 = inlined_call_operand.vmem [shape: f32[1,20], index: 2, kind: input, shape index: {}]   ;;  %s786_s3 = inlined_call_operand.vmem [shape: f32[20,128], index: 3, kind: input, shape index: {}]   ;;  %s787_s4 = inlined_call_operand.vmem [shape: f32[1,128], index: 4, kind: input, shape index: {}]   ;;  %s788_s5 = inlined_call_operand.hbm [shape: f32[16,128], index: 5, kind: output, shape index: {}]  }
   0x1   :  { %v58_v0 = vld [vmem:[%s784_s1 + $0x78] sm:$0xff]  ;;  %v57_v1 = vld [vmem:[%s784_s1 + $0x70] sm:$0xff]  ;;  %v56_v4 = vld [vmem:[%s784_s1 + $0x68] sm:$0xff] }
   0x2   :  { %v74_v2 = vld [vmem:[%s784_s1 + $0xf8] sm:$0xff]  ;;  %152 = vmatpush.msra.mxu0 %v58_v0  ;;  %v73_v3 = vld [vmem:[%s784_s1 + $0xf0] sm:$0xff]  ;;  %v72_v5 = vld [vmem:[%s784_s1 + $0xe8] sm:$0xff] }
   0x3   :  { %175 = vmatpush.msra.mxu1 %v74_v2  ;;  %v55_v6 = vld [vmem:[%s784_s1 + $0x60] sm:$0xff]  ;;  %v90_v8 = vld [vmem:[%s784_s1 + $0x178] sm:$0xff]  ;;  %v89_v9 = vld [vmem:[%s784_s1 + $0x170] sm:$0xff] }
   0x4   :  { %153 = vmatpush.msra.mxu0 %v57_v1  ;;  %v71_v7 = vld [vmem:[%s784_s1 + $0xe0] sm:$0xff]  ;;  %v106_v10 = vld [vmem:[%s784_s1 + $0x1f8] sm:$0xff]  ;;  %198 = vmatpush.msra.mxu2 %v90_v8  ;;  %v88_v13 = vld [vmem:[%s784_s1 + $0x168] sm:$0xff] }
   0x5   :  { %176 = vmatpush.msra.mxu1 %v73_v3  ;;  %v54_v11 = vld [vmem:[%s784_s1 + $0x58] sm:$0xff]  ;;  %221 = vmatpush.msra.mxu3 %v106_v10  ;;  %v105_v14 = vld [vmem:[%s784_s1 + $0x1f0] sm:$0xff]  ;;  %v104_v17 = vld [vmem:[%s784_s1 + $0x1e8] sm:$0xff] }
   0x6   :  { %154 = vmatpush.msra.mxu0 %v56_v4  ;;  %v70_v12 = vld [vmem:[%s784_s1 + $0xd8] sm:$0xff]  ;;  %v53_v15 = vld [vmem:[%s784_s1 + $0x50] sm:$0xff]  ;;  %199 = vmatpush.msra.mxu2 %v89_v9  ;;  %v87_v18 = vld [vmem:[%s784_s1 + $0x160] sm:$0xff] }
   0x7   :  { %177 = vmatpush.msra.mxu1 %v72_v5  ;;  %v69_v16 = vld [vmem:[%s784_s1 + $0xd0] sm:$0xff]  ;;  %222 = vmatpush.msra.mxu3 %v105_v14  ;;  %v103_v19 = vld [vmem:[%s784_s1 + $0x1e0] sm:$0xff]  ;;  %v52_v20 = vld [vmem:[%s784_s1 + $0x48] sm:$0xff] }
   0x8   :  { %155 = vmatpush.msra.mxu0 %v55_v6  ;;  %v68_v21 = vld [vmem:[%s784_s1 + $0xc8] sm:$0xff]  ;;  %200 = vmatpush.msra.mxu2 %v88_v13  ;;  %v86_v22 = vld [vmem:[%s784_s1 + $0x158] sm:$0xff]  ;;  %v51_v24 = vld [vmem:[%s784_s1 + $0x40] sm:$0xff] }
   0x9   :  { %178 = vmatpush.msra.mxu1 %v71_v7  ;;  %223 = vmatpush.msra.mxu3 %v104_v17  ;;  %v102_v23 = vld [vmem:[%s784_s1 + $0x1d8] sm:$0xff]  ;;  %v67_v25 = vld [vmem:[%s784_s1 + $0xc0] sm:$0xff]  ;;  %v85_v26 = vld [vmem:[%s784_s1 + $0x150] sm:$0xff] }
   0xa   :  { %156 = vmatpush.msra.mxu0 %v54_v11  ;;  %201 = vmatpush.msra.mxu2 %v87_v18  ;;  %v101_v27 = vld [vmem:[%s784_s1 + $0x1d0] sm:$0xff]  ;;  %v50_v28 = vld [vmem:[%s784_s1 + $0x38] sm:$0xff]  ;;  %v84_v30 = vld [vmem:[%s784_s1 + $0x148] sm:$0xff] }
   0xb   :  { %179 = vmatpush.msra.mxu1 %v70_v12  ;;  %224 = vmatpush.msra.mxu3 %v103_v19  ;;  %v66_v29 = vld [vmem:[%s784_s1 + $0xb8] sm:$0xff]  ;;  %v100_v31 = vld [vmem:[%s784_s1 + $0x1c8] sm:$0xff]  ;;  %v49_v32 = vld [vmem:[%s784_s1 + $0x30] sm:$0xff] }
   0xc   :  { %157 = vmatpush.msra.mxu0 %v53_v15  ;;  %202 = vmatpush.msra.mxu2 %v86_v22  ;;  %v65_v33 = vld [vmem:[%s784_s1 + $0xb0] sm:$0xff]  ;;  %v83_v34 = vld [vmem:[%s784_s1 + $0x140] sm:$0xff]  ;;  %v48_v36 = vld [vmem:[%s784_s1 + $0x28] sm:$0xff] }
   0xd   :  { %180 = vmatpush.msra.mxu1 %v69_v16  ;;  %225 = vmatpush.msra.mxu3 %v102_v23  ;;  %v99_v35 = vld [vmem:[%s784_s1 + $0x1c0] sm:$0xff]  ;;  %v64_v37 = vld [vmem:[%s784_s1 + $0xa8] sm:$0xff]  ;;  %v82_v38 = vld [vmem:[%s784_s1 + $0x138] sm:$0xff] }
   0xe   :  { %158 = vmatpush.msra.mxu0 %v52_v20  ;;  %203 = vmatpush.msra.mxu2 %v85_v26  ;;  %v98_v39 = vld [vmem:[%s784_s1 + $0x1b8] sm:$0xff]  ;;  %v47_v40 = vld [vmem:[%s784_s1 + $0x20] sm:$0xff]  ;;  %v81_v42 = vld [vmem:[%s784_s1 + $0x130] sm:$0xff] }
   0xf   :  { %181 = vmatpush.msra.mxu1 %v68_v21  ;;  %226 = vmatpush.msra.mxu3 %v101_v27  ;;  %v63_v41 = vld [vmem:[%s784_s1 + $0xa0] sm:$0xff]  ;;  %v97_v43 = vld [vmem:[%s784_s1 + $0x1b0] sm:$0xff]  ;;  %v46_v44 = vld [vmem:[%s784_s1 + $0x18] sm:$0xff] }
  0x10   :  { %159 = vmatpush.msra.mxu0 %v51_v24  ;;  %204 = vmatpush.msra.mxu2 %v84_v30  ;;  %v62_v45 = vld [vmem:[%s784_s1 + $0x98] sm:$0xff]  ;;  %v80_v46 = vld [vmem:[%s784_s1 + $0x128] sm:$0xff]  ;;  %v45_v48 = vld [vmem:[%s784_s1 + $0x10] sm:$0xff] }
  0x11   :  { %182 = vmatpush.msra.mxu1 %v67_v25  ;;  %227 = vmatpush.msra.mxu3 %v100_v31  ;;  %v96_v47 = vld [vmem:[%s784_s1 + $0x1a8] sm:$0xff]  ;;  %v61_v49 = vld [vmem:[%s784_s1 + $0x90] sm:$0xff]  ;;  %v79_v50 = vld [vmem:[%s784_s1 + $0x120] sm:$0xff] }
  0x12   :  { %160 = vmatpush.msra.mxu0 %v50_v28  ;;  %205 = vmatpush.msra.mxu2 %v83_v34  ;;  %v95_v51 = vld [vmem:[%s784_s1 + $0x1a0] sm:$0xff]  ;;  %v44_v52 = vld [vmem:[%s784_s1 + $0x8] sm:$0xff]  ;;  %v78_v54 = vld [vmem:[%s784_s1 + $0x118] sm:$0xff] }
  0x13   :  { %183 = vmatpush.msra.mxu1 %v66_v29  ;;  %228 = vmatpush.msra.mxu3 %v99_v35  ;;  %v60_v53 = vld [vmem:[%s784_s1 + $0x88] sm:$0xff]  ;;  %v94_v55 = vld [vmem:[%s784_s1 + $0x198] sm:$0xff]  ;;  %v43_v56 = vld [vmem:[%s784_s1] sm:$0xff] }
  0x14   :  { %161 = vmatpush.msra.mxu0 %v49_v32  ;;  %206 = vmatpush.msra.mxu2 %v82_v38  ;;  %v59_v57 = vld [vmem:[%s784_s1 + $0x80] sm:$0xff]  ;;  %v122_v58 = vld [vmem:[%s784_s1 + $0x278] sm:$0xff]  ;;  %v77_v60 = vld [vmem:[%s784_s1 + $0x110] sm:$0xff] }
  0x15   :  { %184 = vmatpush.msra.mxu1 %v65_v33  ;;  %229 = vmatpush.msra.mxu3 %v98_v39  ;;  %v138_v59 = vld [vmem:[%s784_s1 + $0x2f8] sm:$0xff]  ;;  %v93_v61 = vld [vmem:[%s784_s1 + $0x190] sm:$0xff]  ;;  %v76_v0 = vld [vmem:[%s784_s1 + $0x108] sm:$0xff] }
  0x16   :  { %162 = vmatpush.msra.mxu0 %v48_v36  ;;  %207 = vmatpush.msra.mxu2 %v81_v42  ;;  %v121_v62 = vld [vmem:[%s784_s1 + $0x270] sm:$0xff]  ;;  %v92_v1 = vld [vmem:[%s784_s1 + $0x188] sm:$0xff]  ;;  %v21_v3 = vld [vmem:[%s783_s0] sm:$0xff] }
  0x17   :  { %185 = vmatpush.msra.mxu1 %v64_v37  ;;  %230 = vmatpush.msra.mxu3 %v97_v43  ;;  %v137_v63 = vld [vmem:[%s784_s1 + $0x2f0] sm:$0xff]  ;;  %v22_v2 = vld [vmem:[%s783_s0 + $0x8] sm:$0xff]  ;;  %v119_v6 = vld [vmem:[%s784_s1 + $0x260] sm:$0xff]  ;;  %v29_v11 = vunpack.c.l.bf16 %v21_v3 }
  0x18   :  { %163 = vmatpush.msra.mxu0 %v47_v40  ;;  %208 = vmatpush.msra.mxu2 %v80_v46  ;;  %v120_v4 = vld [vmem:[%s784_s1 + $0x268] sm:$0xff]  ;;  %v75_v7 = vld [vmem:[%s784_s1 + $0x100] sm:$0xff]  ;;  %v31_v10 = vunpack.c.l.bf16 %v22_v2 }
  0x19   :  { %186 = vmatpush.msra.mxu1 %v63_v41  ;;  %231 = vmatpush.msra.mxu3 %v96_v47  ;;  %v136_v5 = vld [vmem:[%s784_s1 + $0x2e8] sm:$0xff]  ;;  %v91_v8 = vld [vmem:[%s784_s1 + $0x180] sm:$0xff] }
  0x1a   :  { %164 = vmatpush.msra.mxu0 %v46_v44  ;;  %209 = vmatpush.msra.mxu2 %v79_v50  ;;  %v135_v9 = vld [vmem:[%s784_s1 + $0x2e0] sm:$0xff] }
  0x1b   :  { %187 = vmatpush.msra.mxu1 %v62_v45  ;;  %232 = vmatpush.msra.mxu3 %v95_v51 }
  0x1c   :  { %165 = vmatpush.msra.mxu0 %v45_v48  ;;  %210 = vmatpush.msra.mxu2 %v78_v54 }
  0x1d   :  { %188 = vmatpush.msra.mxu1 %v61_v49  ;;  %233 = vmatpush.msra.mxu3 %v94_v55 }
  0x1e   :  { %166 = vmatpush.msra.mxu0 %v44_v52  ;;  %211 = vmatpush.msra.mxu2 %v77_v60 }
  0x1f   :  { %189 = vmatpush.msra.mxu1 %v60_v53  ;;  %234 = vmatpush.msra.mxu3 %v93_v61 }
  0x20   :  { %167 = vmatpush.msra.mxu0 %v43_v56  ;;  %212 = vmatpush.msra.mxu2 %v76_v0 }
  0x21   :  { %190 = vmatpush.msra.mxu1 %v59_v57  ;;  %235 = vmatpush.msra.mxu3 %v92_v1 }
  0x22   :  { %244 = vmatpush.msrb.mxu0 %v122_v58 }
  0x23   :  { %267 = vmatpush.msrb.mxu1 %v138_v59 }
  0x24   :  { %245 = vmatpush.msrb.mxu0 %v121_v62 }
  0x25   :  { %268 = vmatpush.msrb.mxu1 %v137_v63 }
  0x26   :  { %246 = vmatpush.msrb.mxu0 %v120_v4 }
  0x27   :  { %269 = vmatpush.msrb.mxu1 %v136_v5 }
  0x28   :  { %10 = vsyncpa [#allocation3], 0  ;;  %v118_v12 = vld [vmem:[%s784_s1 + $0x258] sm:$0xff]  ;;  %213 = vmatpush.msra.mxu2 %v75_v7  ;;  %236 = vmatpush.msra.mxu3 %v91_v8  ;;  %v32_v14 = vunpack.c.h.bf16 %v22_v2  ;;  %v140_v15 = vld [vmem:[%s784_s1 + $0x308] sm:$0xff]  ;;  %v30_v18 = vunpack.c.h.bf16 %v21_v3  ;;  %vm145_vm0 = vcmask 130048   ;;  %vm329_vm1 = vcmask 1043456  }
  0x29   :  { %v134_v13 = vld [vmem:[%s784_s1 + $0x2d8] sm:$0xff]  ;;  %247 = vmatpush.msrb.mxu0 %v119_v6  ;;  %270 = vmatpush.msrb.mxu1 %v135_v9  ;;  %v117_v16 = vld [vmem:[%s784_s1 + $0x250] sm:$0xff]  ;;  %v26_v19 = vld [vmem:[%s783_s0 + $0x24] sm:$0xff]  ;;  %vm322_vm2 = vcmask 162816   ;;  %s412_s11 = smov [#allocation2]   ;;  %s364_s15 = sshll.u32 %s788_s5, 4  ;;  %s365_s15 = int_to_ptr.hbm [resolvable:$true] %s364_s15 }
  0x2a   :  { %v133_v17 = vld [vmem:[%s784_s1 + $0x2d0] sm:$0xff]  ;;  %214 = vmatmul.f32.vlgmr.msra.gmra.mxu2 %v31_v10  ;;  %168 = vmatmul.f32.vlgmr.msra.gmra.mxu0 %v29_v11  ;;  %v139_v20 = vld [vmem:[%s784_s1 + $0x300] sm:$0xff]  ;;  %v116_v22 = vld [vmem:[%s784_s1 + $0x248] sm:$0xff]  ;;  %v38_v26 = vunpack.c.l.bf16 %v26_v19  ;;  %v39_v30 = vunpack.c.h.bf16 %v26_v19  ;;  %s362_s12 = sshll.u32 %s412_s11, 4  ;;  %s413_s16 = smov 128   ;;  %s363_s12 = int_to_ptr.vmem [resolvable:$true] %s362_s12 }
  0x2b   :  { %248 = vmatpush.msrb.mxu0 %v118_v12  ;;  %271 = vmatpush.msrb.mxu1 %v134_v13  ;;  %v25_v21 = vld [vmem:[%s783_s0 + $0x1c] sm:$0xff]  ;;  %v132_v23 = vld [vmem:[%s784_s1 + $0x2c8] sm:$0xff]  ;;  %v113_v31 = vld [vmem:[%s784_s1 + $0x230] sm:$0xff]  ;;  %s414_s17 = smov 8  }
  0x2c   :  { %304 = vmatpush.msrb.mxu2 %v140_v15  ;;  %237 = vmatmul.f32.vlgmr.msra.gmra.mxu3 %v32_v14  ;;  %v115_v24 = vld [vmem:[%s784_s1 + $0x240] sm:$0xff]  ;;  %v36_v27 = vunpack.c.l.bf16 %v25_v21  ;;  %v114_v28 = vld [vmem:[%s784_s1 + $0x238] sm:$0xff]  ;;  %v129_v32 = vld [vmem:[%s784_s1 + $0x2b0] sm:$0xff]  ;;  %v37_v33 = vunpack.c.h.bf16 %v25_v21 }
  0x2d   :  { %249 = vmatpush.msrb.mxu0 %v117_v16  ;;  %272 = vmatpush.msrb.mxu1 %v133_v17  ;;  %v131_v25 = vld [vmem:[%s784_s1 + $0x2c0] sm:$0xff]  ;;  %v130_v29 = vld [vmem:[%s784_s1 + $0x2b8] sm:$0xff]  ;;  %v112_v35 = vld [vmem:[%s784_s1 + $0x228] sm:$0xff] }
  0x2e   :  { %191 = vmatmul.f32.vlgmr.msra.gmra.mxu1 %v30_v18  ;;  %305 = vmatpush.msrb.mxu2 %v139_v20  ;;  %v24_v34 = vld [vmem:[%s783_s0 + $0x18] sm:$0xf]  ;;  %v128_v36 = vld [vmem:[%s784_s1 + $0x2a8] sm:$0xff]  ;;  %v111_v37 = vld [vmem:[%s784_s1 + $0x220] sm:$0xff] }
  0x2f   :  { %250 = vmatpush.msrb.mxu0 %v116_v22  ;;  %273 = vmatpush.msrb.mxu1 %v132_v23  ;;  %v127_v38 = vld [vmem:[%s784_s1 + $0x2a0] sm:$0xff]  ;;  %v35_v39 = vunpack.c.l.bf16 %v24_v34  ;;  %v110_v40 = vld [vmem:[%s784_s1 + $0x218] sm:$0xff]  ;;  %v109_v42 = vld [vmem:[%s784_s1 + $0x210] sm:$0xff] }
  0x30   :  { %v126_v41 = vld [vmem:[%s784_s1 + $0x298] sm:$0xff]  ;;  %v125_v43 = vld [vmem:[%s784_s1 + $0x290] sm:$0xff]  ;;  %v108_v45 = vld [vmem:[%s784_s1 + $0x208] sm:$0xff] }
  0x31   :  { %251 = vmatpush.msrb.mxu0 %v115_v24  ;;  %274 = vmatpush.msrb.mxu1 %v131_v25  ;;  %v23_v44 = vld [vmem:[%s783_s0 + $0x10] sm:$0xff]  ;;  %v124_v46 = vld [vmem:[%s784_s1 + $0x288] sm:$0xff]  ;;  %v107_v48 = vld [vmem:[%s784_s1 + $0x200] sm:$0xff] }
  0x32   :  { %217 = vmatmul.f32.gmra.mxu2 %v38_v26  ;;  %171 = vmatmul.f32.gmra.mxu0 %v36_v27  ;;  %v28_v47 = vld [vmem:[%s783_s0 + $0x34] sm:$0xf]  ;;  %v33_v49 = vunpack.c.l.bf16 %v23_v44  ;;  %v123_v50 = vld [vmem:[%s784_s1 + $0x280] sm:$0xff]  ;;  %v34_v51 = vunpack.c.h.bf16 %v23_v44  ;;  %v27_v53 = vld [vmem:[%s783_s0 + $0x2c] sm:$0xff] }
  0x33   :  { %252 = vmatpush.msrb.mxu0 %v114_v28  ;;  %275 = vmatpush.msrb.mxu1 %v130_v29  ;;  %v42_v52 = vunpack.c.l.bf16 %v28_v47  ;;  %v40_v54 = vunpack.c.l.bf16 %v27_v53  ;;  %v41_v55 = vunpack.c.h.bf16 %v27_v53  ;;  %v317_v56 = vld [vmem:[%s786_s3 + $0x10] sm:$0xf]  ;;  %v316_v57 = vld [vmem:[%s786_s3 + $0x8] sm:$0xff]  ;;  %v315_v58 = vld [vmem:[%s786_s3] sm:$0xff] }
  0x34   :  { %240 = vmatmul.f32.gmra.mxu3 %v39_v30  ;;  %v384_v62 = vld [vmem:[%s785_s2] ss:$0 sm:$0xff] }
  0x35   :  { %253 = vmatpush.msrb.mxu0 %v113_v31  ;;  %276 = vmatpush.msrb.mxu1 %v129_v32  ;;  %v385_v26 = vld [vmem:[%s787_s4] ss:$0 sm:$0xff] }
  0x36   :  { %194 = vmatmul.f32.gmra.mxu1 %v37_v33  ;;  %378 = vmatpush.msk.msrb.mxu3 %vm329_vm1, %v317_v56 }
  0x37   :  { %254 = vmatpush.msrb.mxu0 %v112_v35  ;;  %277 = vmatpush.msrb.mxu1 %v128_v36 }
  0x38   :  { %347 = vmatpush.msrb.mxu3 %v316_v57 }
  0x39   :  { %255 = vmatpush.msrb.mxu0 %v111_v37  ;;  %278 = vmatpush.msrb.mxu1 %v127_v38 }
  0x3a   :  { %376 = vmatmul.msk.f32.vlgmr.msrb.gmra.mxu2 %vm145_vm0, %v35_v39  ;;  %348 = vmatpush.msrb.mxu3 %v315_v58 }
  0x3b   :  { %256 = vmatpush.msrb.mxu0 %v110_v40  ;;  %279 = vmatpush.msrb.mxu1 %v126_v41 }
  0x3d   :  { %257 = vmatpush.msrb.mxu0 %v109_v42  ;;  %280 = vmatpush.msrb.mxu1 %v125_v43 }
  0x3f   :  { %258 = vmatpush.msrb.mxu0 %v108_v45  ;;  %281 = vmatpush.msrb.mxu1 %v124_v46 }
  0x41   :  { %259 = vmatpush.msrb.mxu0 %v107_v48  ;;  %282 = vmatpush.msrb.mxu1 %v123_v50 }
  0x42   :  { %260 = vmatmul.f32.vlgmr.msrb.gmra.mxu0 %v33_v49  ;;  %283 = vmatmul.f32.vlgmr.msrb.gmra.mxu1 %v34_v51 }
  0x43   :  { %377 = vmatmul.msk.f32.gmra.mxu2 %vm145_vm0, %v42_v52 }
  0x4a   :  { %263 = vmatmul.f32.gmra.mxu0 %v40_v54  ;;  %286 = vmatmul.f32.gmra.mxu1 %v41_v55 }
  0xa7   :  { %v169_v59 = vpop.f32.mrf.mxu0 }
  0xa8   :  { %v170_v63 = vadd.f32 %v384_v62, %v169_v59 }
  0xab   :  { %v192_v60 = vpop.f32.mrf.mxu1 }
  0xac   :  { %v193_v3 = vadd.f32 %v192_v60, %v170_v63 }
  0xad   :  { %v215_v61 = vpop.f32.mrf.mxu2 }
  0xae   :  { %v216_v5 = vadd.f32 %v215_v61, %v193_v3 }
  0xaf   :  { %v172_v0 = vpop.f32.mrf.mxu0  ;;  %v238_v4 = vpop.f32.mrf.mxu3 }
  0xb0   :  { %v173_v6 = vadd.f32 %v384_v62, %v172_v0  ;;  %v239_v7 = vadd.f32 %v238_v4, %v216_v5 }
  0xb3   :  { %v195_v1 = vpop.f32.mrf.mxu1 }
  0xb4   :  { %v196_v8 = vadd.f32 %v195_v1, %v173_v6 }
  0xb5   :  { %v218_v2 = vpop.f32.mrf.mxu2 }
  0xb6   :  { %v219_v13 = vadd.f32 %v218_v2, %v196_v8 }
  0xb7   :  { %v241_v15 = vpop.f32.mrf.mxu3 }
  0xb8   :  { %v242_v17 = vadd.f32 %v241_v15, %v219_v13 }
  0xbd   :  { %v307_v9 = vpop.f32.mrf.mxu2 }
  0xbf   :  { %v261_v10 = vpop.f32.mrf.mxu0  ;;  %v284_v11 = vpop.f32.mrf.mxu1 }
  0xc0   :  { %v262_v12 = vadd.f32 %v261_v10, %v239_v7 }
  0xc2   :  { %v285_v14 = vadd.f32 %v284_v11, %v262_v12 }
  0xc4   :  { %v308_v16 = vadd.f32 %v307_v9, %v285_v14 }
  0xc6   :  { %v313_v18 = vmax.f32 %v308_v16, 0.0  ;;  %v310_v22 = vpop.f32.mrf.mxu2 }
  0xc7   :  { %v264_v19 = vpop.f32.mrf.mxu0  ;;  %v287_v20 = vpop.f32.mrf.mxu1 }
  0xc8   :  { %v265_v21 = vadd.f32 %v264_v19, %v242_v17  ;;  %379 = vmatmul.msk.f32.vlgmr.msrb.gmra.mxu3 %vm322_vm2, %v313_v18 }
  0xca   :  { %v288_v23 = vadd.f32 %v287_v20, %v265_v21 }
  0xcc   :  { %v311_v24 = vadd.f32 %v310_v22, %v288_v23 }
  0xce   :  { %v314_v25 = vmax.f32 %v311_v24, 0.0 }
  0xd0   :  { %380 = vmatmul.msk.f32.gmra.mxu3 %vm322_vm2, %v314_v25 }
 0x14b   :  { %v350_v27 = vpop.f32.mrf.mxu3 }
 0x14c   :  { %v351_v28 = vadd.f32 %v385_v26, %v350_v27 }
 0x14e   :  { %356 = vst [vmem:[#allocation2] sm:$0xff] %v351_v28 }
 0x153   :  { %v353_v29 = vpop.f32.mrf.mxu3 }
 0x154   :  { %v354_v30 = vadd.f32 %v385_v26, %v353_v29 }
 0x156   :  { %357 = vst [vmem:[#allocation2 + $0x8] sm:$0xff] %v354_v30 }
 0x157   :  { %370 = dma.vmem_to_hbm [thread:$0]  %s363_s12, 256, %s365_s15, [#allocation3], %s413_s16, %s413_s16, %s414_s17  }
 0x158   :  { %410 = dma.done.wait [#allocation3], 256  }
 0x159   :  { %411 = vsyncadd [#allocation3], 4294967040 }
 0x15a   :  { %375 = vsyncpa [#allocation3], 1 }

</bundles_post_ra>
